<compile_context>
chip_gen: v6e
topology: v6e:2x2x1
jax: 0.10.0
libtpu: 0.0.40
codegen_flags: <defaults>
</compile_context>

<pallas_src>
import functools

import jax
import jax.numpy as jnp
from jax.experimental import pallas as pl
from jax.experimental.pallas import tpu as pltpu

_LANE = 128
_NEG_INF = -1e30  # finite sentinel: exp(-1e30 - m) underflows to exactly 0


def _round_up(x, m):
    return ((x + m - 1) // m) * m


def _policy_kernel(x_ref, w1_ref, b1_ref, w2_ref, b2_ref, out_ref):
    # hidden = ReLU(x @ W1 + b1)   -- bf16 MXU matmul, f32 accumulate
    h = jnp.dot(x_ref[...], w1_ref[...], preferred_element_type=jnp.float32)
    h = jnp.maximum(h + b1_ref[...], 0.0)
    # logits = h @ W2 + b2 ; padded action columns carry a -1e30 bias so they
    # contribute exp(...) = 0 to the softmax denominator.
    logits = jnp.dot(h.astype(jnp.bfloat16), w2_ref[...],
                     preferred_element_type=jnp.float32) + b2_ref[...]
    # numerically stable softmax over the (padded, lane-dense) action axis
    m = jnp.max(logits, axis=-1, keepdims=True)
    e = jnp.exp(logits - m)
    denom = jnp.sum(e, axis=-1, keepdims=True)
    out_ref[...] = (e * pl.reciprocal(denom, approx=True)).astype(out_ref.dtype)


@functools.partial(jax.jit, static_argnames=("tb",))
def policy_model_forward(state, w1, b1, w2, b2, *, tb=None):
    """state: [B, state_dim] -> action probabilities [B, action_dim] (float32)."""
    B, state_dim = state.shape
    hidden_dim = w1.shape[1]
    action_dim = w2.shape[1]

    h_pad = _round_up(hidden_dim, _LANE)
    a_pad = _round_up(action_dim, _LANE)

    # Batch tile: big enough to amortize the ~0.35us per-grid-step overhead,
    # multiple of 16 so bf16 sublane packing is clean.
    if tb is None:
        tb = min(_round_up(B, 16), 256)
    b_pad = _round_up(B, tb)

    # Pad weights to MXU lane width (zeros); padded action-bias entries = -1e30.
    w1_p = jnp.zeros((state_dim, h_pad), jnp.bfloat16).at[:, :hidden_dim].set(
        w1.astype(jnp.bfloat16))
    b1_p = jnp.zeros((1, h_pad), jnp.float32).at[:, :hidden_dim].set(
        b1.reshape(1, hidden_dim).astype(jnp.float32))
    w2_p = jnp.zeros((h_pad, a_pad), jnp.bfloat16).at[:hidden_dim, :action_dim].set(
        w2.astype(jnp.bfloat16))
    b2_p = jnp.full((1, a_pad), _NEG_INF, jnp.float32).at[:, :action_dim].set(
        b2.reshape(1, action_dim).astype(jnp.float32))

    # Pad batch (padded rows are sliced off afterwards) and cast to bf16.
    x_p = jnp.zeros((b_pad, state_dim), jnp.bfloat16).at[:B].set(
        state.astype(jnp.bfloat16))

    out = pl.pallas_call(
        _policy_kernel,
        out_shape=jax.ShapeDtypeStruct((b_pad, a_pad), jnp.float32),
        grid_spec=pltpu.PrefetchScalarGridSpec(
            num_scalar_prefetch=0,
            grid=(b_pad // tb,),
            in_specs=[
                pl.BlockSpec((tb, state_dim), lambda i: (i, 0)),     # state tiles
                pl.BlockSpec((state_dim, h_pad), lambda i: (0, 0)),  # W1 (resident)
                pl.BlockSpec((1, h_pad), lambda i: (0, 0)),          # b1 (resident)
                pl.BlockSpec((h_pad, a_pad), lambda i: (0, 0)),      # W2 (resident)
                pl.BlockSpec((1, a_pad), lambda i: (0, 0)),          # b2 (resident)
            ],
            out_specs=pl.BlockSpec((tb, a_pad), lambda i: (i, 0)),   # lane-dense
        ),
        compiler_params=pltpu.CompilerParams(
            dimension_semantics=("parallel",),  # shard batch across TCs (v7x)
        ),
    )(x_p, w1_p, b1_p, w2_p, b2_p)

    return out[:B, :action_dim]


def init_params(key, state_dim, action_dim, hidden_dim=64):
    """Deterministic init mirroring torch.nn.Linear (U(-1/sqrt(fan_in), +))."""
    k1, k2, k3, k4 = jax.random.split(key, 4)
    lim1 = 1.0 / jnp.sqrt(jnp.float32(state_dim))
    lim2 = 1.0 / jnp.sqrt(jnp.float32(hidden_dim))
    w1 = jax.random.uniform(k1, (state_dim, hidden_dim), jnp.float32, -lim1, lim1)
    b1 = jax.random.uniform(k2, (1, hidden_dim), jnp.float32, -lim1, lim1)
    w2 = jax.random.uniform(k3, (hidden_dim, action_dim), jnp.float32, -lim2, lim2)
    b2 = jax.random.uniform(k4, (1, action_dim), jnp.float32, -lim2, lim2)
    return w1, b1, w2, b2


if __name__ == "__main__":
    key = jax.random.PRNGKey(0)
    k_state, k_params = jax.random.split(key)

    batch, state_dim, action_dim, hidden_dim = 8, 32, 16, 64
    state = jax.random.normal(k_state, (batch, state_dim), jnp.float32)
    w1, b1, w2, b2 = init_params(k_params, state_dim, action_dim, hidden_dim)

    probs = policy_model_forward(state, w1, b1, w2, b2)
    probs = jax.block_until_ready(probs)
    assert probs.shape == (batch, action_dim)

    # Reference with matching bf16 matmul precision (tight tolerance).
    xb = state.astype(jnp.bfloat16)
    h_ref = jnp.maximum(
        jnp.dot(xb, w1.astype(jnp.bfloat16), preferred_element_type=jnp.float32) + b1,
        0.0)
    logits_ref = jnp.dot(h_ref.astype(jnp.bfloat16), w2.astype(jnp.bfloat16),
                         preferred_element_type=jnp.float32) + b2
    probs_ref = jax.nn.softmax(logits_ref, axis=-1)
    assert jnp.allclose(probs, probs_ref, atol=5e-3, rtol=5e-3)

    # Full-precision f32 reference (looser, accounts for bf16 operand rounding).
    probs_f32 = jax.nn.softmax(jnp.maximum(state @ w1 + b1, 0.0) @ w2 + b2, axis=-1)
    assert jnp.allclose(probs, probs_f32, atol=3e-2, rtol=3e-2)

    # Probabilities sum to 1 (approx reciprocal => small slack).
    assert jnp.allclose(jnp.sum(probs, axis=-1), 1.0, atol=1e-2)

    print("KERNEL_OK")
</pallas_src>

<mosaic_0001>
module attributes {stable_mosaic.version = 11 : i64} {
  func.func @_policy_kernel(%arg0: i32, %arg1: memref<16x32xbf16, #tpu.memory_space<vmem>>, %arg2: memref<32x128xbf16, #tpu.memory_space<vmem>>, %arg3: memref<1x128xf32, #tpu.memory_space<vmem>>, %arg4: memref<128x128xbf16, #tpu.memory_space<vmem>>, %arg5: memref<1x128xf32, #tpu.memory_space<vmem>>, %arg6: memref<16x128xf32, #tpu.memory_space<vmem>>) attributes {dimension_semantics = [#tpu.dimension_semantics<parallel>], iteration_bounds = array<i64: 1>, scalar_prefetch = 0 : i64, scratch_operands = 0 : i64, tpu.core_type = #tpu.core_type<tc>, window_params = [{transform_indices = @transform_0, window_bounds = array<i64: 16, 32>}, {pipeline_mode = #tpu.pipeline_mode<synchronous>, transform_indices = @transform_1, window_bounds = array<i64: 32, 128>}, {pipeline_mode = #tpu.pipeline_mode<synchronous>, transform_indices = @transform_2, window_bounds = array<i64: 1, 128>}, {pipeline_mode = #tpu.pipeline_mode<synchronous>, transform_indices = @transform_3, window_bounds = array<i64: 128, 128>}, {pipeline_mode = #tpu.pipeline_mode<synchronous>, transform_indices = @transform_4, window_bounds = array<i64: 1, 128>}, {transform_indices = @transform_5, window_bounds = array<i64: 16, 128>}]} {
    %c0 = arith.constant 0 : index
    %c0_0 = arith.constant 0 : index
    %0 = vector.load %arg1[%c0, %c0_0] : memref<16x32xbf16, #tpu.memory_space<vmem>>, vector<16x32xbf16>
    %c0_1 = arith.constant 0 : index
    %c0_2 = arith.constant 0 : index
    %1 = vector.load %arg2[%c0_1, %c0_2] : memref<32x128xbf16, #tpu.memory_space<vmem>>, vector<32x128xbf16>
    %cst = arith.constant dense<0.000000e+00> : vector<16x128xf32>
    %2 = tpu.matmul %0, %1, %cst {dimension_numbers = #tpu.dot_dimension_numbers<[1], [0], [0], [1], [0, 0, 1, 1], [], []>} : vector<16x32xbf16>, vector<32x128xbf16>, vector<16x128xf32> -> vector<16x128xf32>
    %c0_3 = arith.constant 0 : index
    %c0_4 = arith.constant 0 : index
    %3 = vector.load %arg3[%c0_3, %c0_4] : memref<1x128xf32, #tpu.memory_space<vmem>>, vector<1x128xf32>
    %4 = vector.broadcast %3 : vector<1x128xf32> to vector<16x128xf32>
    %5 = arith.addf %2, %4 : vector<16x128xf32>
    %cst_5 = arith.constant 0.000000e+00 : f32
    %6 = vector.broadcast %cst_5 : f32 to vector<16x128xf32>
    %7 = arith.maximumf %5, %6 : vector<16x128xf32>
    %8 = arith.truncf %7 : vector<16x128xf32> to vector<16x128xbf16>
    %c0_6 = arith.constant 0 : index
    %c0_7 = arith.constant 0 : index
    %9 = vector.load %arg4[%c0_6, %c0_7] : memref<128x128xbf16, #tpu.memory_space<vmem>>, vector<128x128xbf16>
    %cst_8 = arith.constant dense<0.000000e+00> : vector<16x128xf32>
    %10 = tpu.matmul %8, %9, %cst_8 {dimension_numbers = #tpu.dot_dimension_numbers<[1], [0], [0], [1], [0, 0, 1, 1], [], []>} : vector<16x128xbf16>, vector<128x128xbf16>, vector<16x128xf32> -> vector<16x128xf32>
    %c0_9 = arith.constant 0 : index
    %c0_10 = arith.constant 0 : index
    %11 = vector.load %arg5[%c0_9, %c0_10] : memref<1x128xf32, #tpu.memory_space<vmem>>, vector<1x128xf32>
    %12 = vector.broadcast %11 : vector<1x128xf32> to vector<16x128xf32>
    %13 = arith.addf %10, %12 : vector<16x128xf32>
    %cst_11 = arith.constant dense<0xFF800000> : vector<16xf32>
    %14 = vector.multi_reduction <maximumf>, %13, %cst_11 [1] : vector<16x128xf32> to vector<16xf32>
    %15 = vector.shape_cast %14 : vector<16xf32> to vector<16x1xf32>
    %16 = vector.broadcast %15 : vector<16x1xf32> to vector<16x128xf32>
    %17 = arith.subf %13, %16 : vector<16x128xf32>
    %18 = math.exp %17 : vector<16x128xf32>
    %cst_12 = arith.constant dense<0.000000e+00> : vector<16xf32>
    %19 = vector.multi_reduction <add>, %18, %cst_12 [1] : vector<16x128xf32> to vector<16xf32>
    %20 = vector.shape_cast %19 : vector<16xf32> to vector<16x1xf32>
    %21 = tpu.reciprocal %20 {approx = true} : vector<16x1xf32> -> vector<16x1xf32>
    %22 = vector.broadcast %21 : vector<16x1xf32> to vector<16x128xf32>
    %23 = arith.mulf %18, %22 : vector<16x128xf32>
    %c0_13 = arith.constant 0 : index
    %c0_14 = arith.constant 0 : index
    %24 = vector.load %arg6[%c0_13, %c0_14] : memref<16x128xf32, #tpu.memory_space<vmem>>, vector<16x128xf32>
    tpu.vector_store %arg6[%c0_13, %c0_14], %23 {strides = array<i32>} : memref<16x128xf32, #tpu.memory_space<vmem>>, vector<16x128xf32>,
    return
  }
  func.func @transform_0(%arg0: i32) -> (i32, i32) {
    %c0_i32 = arith.constant 0 : i32
    %c0_i32_0 = arith.constant 0 : i32
    return %arg0, %c0_i32 : i32, i32
  }
  func.func @transform_1(%arg0: i32) -> (i32, i32) {
    %c0_i32 = arith.constant 0 : i32
    %c0_i32_0 = arith.constant 0 : i32
    %c0_i32_1 = arith.constant 0 : i32
    return %c0_i32, %c0_i32_0 : i32, i32
  }
  func.func @transform_2(%arg0: i32) -> (i32, i32) {
    %c0_i32 = arith.constant 0 : i32
    %c0_i32_0 = arith.constant 0 : i32
    %c0_i32_1 = arith.constant 0 : i32
    return %c0_i32, %c0_i32_0 : i32, i32
  }
  func.func @transform_3(%arg0: i32) -> (i32, i32) {
    %c0_i32 = arith.constant 0 : i32
    %c0_i32_0 = arith.constant 0 : i32
    %c0_i32_1 = arith.constant 0 : i32
    return %c0_i32, %c0_i32_0 : i32, i32
  }
  func.func @transform_4(%arg0: i32) -> (i32, i32) {
    %c0_i32 = arith.constant 0 : i32
    %c0_i32_0 = arith.constant 0 : i32
    %c0_i32_1 = arith.constant 0 : i32
    return %c0_i32, %c0_i32_0 : i32, i32
  }
  func.func @transform_5(%arg0: i32) -> (i32, i32) {
    %c0_i32 = arith.constant 0 : i32
    %c0_i32_0 = arith.constant 0 : i32
    return %arg0, %c0_i32 : i32, i32
  }
}

</mosaic_0001>

<bundles_post_ra>
// kernel: policy_model_forward.1
= control target key start
LH: loop header
LB: loop body
LE: loop exit
PB: predicated region body
PF: predicated region fallthrough
CT: control target
= control target key end

     0   :  { %v310_v0 = vmov 0.0   ;;  %vm311_vm0 = vmmov 0   ;;  %vm51_vm1 = vcmask 261120   ;;  %s387_s1 = inlined_call_operand.vmem [shape: bf16[32,128], index: 1, kind: input, shape index: {}]   ;;  %s388_s3 = inlined_call_operand.vmem [shape: bf16[128,128], index: 3, kind: input, shape index: {}]   ;;  %s389_s0 = inlined_call_operand.vmem [shape: bf16[16,32], index: 0, kind: input, shape index: {}]   ;;  %s390_s2 = inlined_call_operand.vmem [shape: f32[1,128], index: 2, kind: input, shape index: {}]   ;;  %s391_s4 = inlined_call_operand.vmem [shape: f32[1,128], index: 4, kind: input, shape index: {}]   ;;  %s392_s5 = inlined_call_operand.vmem [shape: f32[16,128], index: 5, kind: output, shape index: {}]  }
   0x1   :  { %261 = vmatprep.subr.bf16.mxu0 %v310_v0  ;;  %v291_v1 = vld [vmem:[%s387_s1 + $0x8] sm:$0xff]   ;;  %265 = vmatprep.mubr.msk.bf16.mxu0 %vm311_vm0, %v310_v0  ;;  %v292_v2 = vld [vmem:[%s387_s1] sm:$0xff]   ;;  %v294_v3 = vld [vmem:[%s388_s3 + $0x38] sm:$0xff]  }
   0x2   :  { %269 = vmatprep.subr.bf16.mxu1 %v310_v0  ;;  %285 = vmatprep.mubr.msk.bf16.mxu1 %vm311_vm0, %v310_v0  ;;  %v293_v4 = vld [vmem:[%s389_s0] sm:$0xff]   ;;  %v295_v5 = vld [vmem:[%s388_s3 + $0x30] sm:$0xff]   ;;  %v296_v6 = vld [vmem:[%s388_s3 + $0x28] sm:$0xff]  }
   0x3   :  { %262 = vmatpush3.bf16.msra.mxu0 %v291_v1  ;;  %270 = vmatpush3.bf16.msra.mxu1 %v294_v3  ;;  %v297_v7 = vld [vmem:[%s388_s3 + $0x20] sm:$0xff]   ;;  %v298_v8 = vld [vmem:[%s388_s3 + $0x18] sm:$0xff]   ;;  %v299_v9 = vld [vmem:[%s388_s3 + $0x10] sm:$0xff]  }
   0x4   :  { %263 = vmatprep.subr.bf16.mxu0 %v310_v0  ;;  %271 = vmatprep.subr.bf16.mxu1 %v310_v0  ;;  %v300_v10 = vld [vmem:[%s388_s3 + $0x8] sm:$0xff]   ;;  %v301_v11 = vld [vmem:[%s388_s3] sm:$0xff]  }
   0x5   :  { %v235_v12 = vld [vmem:[%s390_s2] ss:$0 sm:$0xff] }
   0x6   :  { %v240_v22 = vld [vmem:[%s391_s4] ss:$0 sm:$0xff] }
   0x7   :  { %264 = vmatpush3.bf16.msra.mxu0 %v292_v2  ;;  %272 = vmatpush3.bf16.msra.mxu1 %v295_v5 }
   0x8   :  { %273 = vmatprep.subr.bf16.mxu1 %v310_v0 }
   0xa   :  { %266 = vmatmul.mubr.msk.bf16.vlgmr.msra.gmra.mxu0 %vm51_vm1, %v293_v4 }
   0xb   :  { %274 = vmatpush3.bf16.msra.mxu1 %v296_v6 }
   0xc   :  { %275 = vmatprep.subr.bf16.mxu1 %v310_v0 }
   0xf   :  { %276 = vmatpush3.bf16.msra.mxu1 %v297_v7 }
  0x10   :  { %277 = vmatprep.subr.bf16.mxu1 %v310_v0 }
  0x13   :  { %278 = vmatpush3.bf16.msra.mxu1 %v298_v8 }
  0x14   :  { %279 = vmatprep.subr.bf16.mxu1 %v310_v0 }
  0x17   :  { %280 = vmatpush3.bf16.msra.mxu1 %v299_v9 }
  0x18   :  { %281 = vmatprep.subr.bf16.mxu1 %v310_v0 }
  0x1b   :  { %282 = vmatpush3.bf16.msra.mxu1 %v300_v10 }
  0x1c   :  { %283 = vmatprep.subr.bf16.mxu1 %v310_v0 }
  0x1f   :  { %284 = vmatpush3.bf16.msra.mxu1 %v301_v11 }
  0xca   :  { %v89_v13 = vpop.f32.mrf.mxu0 }
  0xcb   :  { %v90_v15 = vadd.f32 %v235_v12, %v89_v13 }
  0xcc   :  { %v267_v14 = vpop.f32.mrf.mxu0 }
  0xcd   :  { %v96_v19 = vmax.f32 %v90_v15, 0.0 }
  0xce   :  { %v92_v16 = vpop.f32.mrf.mxu0 }
  0xcf   :  { %v93_v17 = vadd.f32 %v235_v12, %v92_v16 }
  0xd0   :  { %v268_v18 = vpop.f32.mrf.mxu0 }
  0xd1   :  { %v97_v20 = vmax.f32 %v93_v17, 0.0 }
  0xd3   :  { %v98_v21 = vpack.c.bf16 %v97_v20, %v96_v19 }
  0xd5   :  { %286 = vmatmul.mubr.bf16.vlgmr.msra.gmra.mxu1 %v98_v21 }
 0x195   :  { %v204_v23 = vpop.f32.mrf.mxu1 }
 0x196   :  { %v205_v24 = vadd.f32 %v240_v22, %v204_v23 }
 0x197   :  { %v287_v25 = vpop.f32.mrf.mxu1 }
 0x198   :  { %211 = vmax.xlane.f32.xlu0 %v205_v24 }
 0x199   :  { %v207_v26 = vpop.f32.mrf.mxu1 }
 0x19a   :  { %v208_v27 = vadd.f32 %v240_v22, %v207_v26 }
 0x19b   :  { %v288_v28 = vpop.f32.mrf.mxu1 }
 0x19c   :  { %213 = vmax.xlane.f32.xlu0 %v208_v27 }
 0x221   :  { %v212_v29 = vpop.xlane.xlu0 %211 }
 0x222   :  { %v215_v30 = vsub.f32 %v205_v24, %v212_v29 }
 0x224   :  { %v217_v31 = vmul.f32 1.442695, %v215_v30 }
 0x225   :  { %v214_v32 = vpop.xlane.xlu0 %213 }
 0x226   :  { %302 = vpow2.f32 %v217_v31  ;;  %v216_v33 = vsub.f32 %v208_v27, %v214_v32 }
 0x228   :  { %v219_v34 = vmul.f32 1.442695, %v216_v33 }
 0x22a   :  { %304 = vpow2.f32 %v219_v34 }
 0x233   :  { %v303_v35 = vpop.eup %302 }
 0x234   :  { %221 = vadd.xlane.f32.xlu1 %v303_v35 }
 0x237   :  { %v305_v36 = vpop.eup %304 }
 0x238   :  { %223 = vadd.xlane.f32.xlu1 %v305_v36 }
 0x2bd   :  { %v222_v37 = vpop.xlane.xlu1 %221 }
 0x2be   :  { %306 = vrcp.f32 %v222_v37 }
 0x2c1   :  { %v224_v38 = vpop.xlane.xlu1 %223 }
 0x2c2   :  { %308 = vrcp.f32 %v224_v38 }
 0x2cb   :  { %v307_v39 = vpop.eup %306 }
 0x2cc   :  { %v227_v40 = vmul.f32 %v307_v39, %v303_v35 }
 0x2ce   :  { %229 = vst [vmem:[%s392_s5] sm:$0xff] %v227_v40 }
 0x2cf   :  { %v309_v41 = vpop.eup %308 }
 0x2d0   :  { %v228_v42 = vmul.f32 %v309_v41, %v305_v36 }
 0x2d2   :  { %230 = vst [vmem:[%s392_s5 + $0x8] sm:$0xff] %v228_v42 }

</bundles_post_ra>
